<compile_context>
chip_gen: v6e
topology: v6e:2x2x1
jax: 0.10.0
libtpu: 0.0.40
codegen_flags: <defaults>
</compile_context>

<pallas_src>
import math

import jax
import jax.numpy as jnp
from jax.experimental import pallas as pl
from jax.experimental.pallas import tpu as pltpu


def _round_up(x, m):
    return ((x + m - 1) // m) * m


def _prod(xs):
    out = 1
    for v in xs:
        out *= v
    return out


def _make_kernel(tab_dtype, gather_precision):
    def kernel(tgt_ref, emat_ref, tab_ref, out_ref):
        # tgt_ref:  (tile_rows, j_pad)  int32  absolute target lane per (fold, dim)
        # emat_ref: (j_pad, lanes_k)    f32    0/1 "broadcast each target across its lane block"
        # tab_ref:  (lanes_k, lane_e)   tab_dtype  block-diagonal fused embedding table
        # out_ref:  (tile_rows, lane_e) out dtype  lane-dense folded output rows
        tgt = tgt_ref[...].astype(jnp.float32)
        # Expand per-row targets to a per-lane RHS with a single tiny-K MXU push.
        # HIGHEST keeps the integer targets exact through the f32 decomposition.
        rhs = jnp.dot(tgt, emat_ref[...],
                      precision=jax.lax.Precision.HIGHEST,
                      preferred_element_type=jnp.float32)
        lane = jax.lax.broadcasted_iota(jnp.int32, rhs.shape, 1).astype(jnp.float32)
        onehot = (lane == rhs).astype(tab_dtype)   # single compare, no fold*n_dim OR chain
        out_ref[...] = jnp.dot(onehot, tab_ref[...],
                               precision=gather_precision,
                               preferred_element_type=jnp.float32).astype(out_ref.dtype)

    return kernel


def broadcasted_position_embedding(position_ids, embeddings, shape, embedding_dim,
                                   out_dtype=jnp.float32):
    """position_ids: (B, S) int; embeddings: list of (shape[i], E // n_dim) float arrays."""
    shape = tuple(int(v) for v in shape)
    n_dim = len(shape)
    assert embedding_dim % n_dim == 0
    d = embedding_dim // n_dim
    e = embedding_dim
    total = _prod(shape)
    offs = [sum(shape[:i]) for i in range(n_dim)]

    out_dtype = jnp.dtype(out_dtype)
    tab_dtype = jnp.dtype(jnp.bfloat16) if out_dtype == jnp.dtype(jnp.bfloat16) \
        else jnp.dtype(jnp.float32)
    out_bytes = out_dtype.itemsize
    tab_bytes = tab_dtype.itemsize

    # Fold consecutive positions so the written block's last dim is a multiple of 128
    # (unmasked vst on the writeback path).
    fold = 128 // math.gcd(e, 128)
    if fold > 16:
        fold = 1  # TODO(synk): awkward embedding_dim; pad lane_e to 128 instead of masked stores
    lane_e = fold * e

    k = sum(shape)
    k_pad = _round_up(k, 8)
    lanes_k = fold * k_pad
    j = fold * n_dim
    j_pad = _round_up(j, 8)

    b, s = position_ids.shape
    n = b * s
    rows = pl.cdiv(n, fold)
    n_fold = rows * fold

    # ---- coordinate divmod chain done once in the wrapper (tiny int arrays) ----
    pos = position_ids.reshape(-1).astype(jnp.int32) % total   # -1 wraps to last index
    if n_fold != n:
        pos = jnp.pad(pos, (0, n_fold - n))                    # < fold extra int32 elements
    coords = [None] * n_dim
    q = pos
    for i in range(n_dim - 1, -1, -1):
        coords[i] = q % shape[i] + offs[i]
        q = q // shape[i]
    tgt = jnp.stack(coords, axis=-1).reshape(rows, fold, n_dim)
    tgt = tgt + (jnp.arange(fold, dtype=jnp.int32) * k_pad)[None, :, None]  # absolute lane
    tgt = tgt.reshape(rows, j).astype(jnp.int32)
    if j_pad != j:
        tgt = jnp.pad(tgt, ((0, 0), (0, j_pad - j)))

    # ---- static tables ----
    emat = jnp.zeros((j_pad, lanes_k), jnp.float32)      # target -> per-lane broadcast
    table = jnp.zeros((lanes_k, lane_e), jnp.float32)    # block-diagonal fused embeddings
    for f in range(fold):
        for i in range(n_dim):
            r0 = f * k_pad + offs[i]
            emat = emat.at[f * n_dim + i, r0:r0 + shape[i]].set(1.0)
            table = table.at[r0:r0 + shape[i],
                             f * e + i * d: f * e + (i + 1) * d].set(
                embeddings[i].astype(jnp.float32))
    table = table.astype(tab_dtype)

    # ---- tile sizing: ~2 MiB output block, >=2 blocks when there is enough work,
    #      double-buffered total kept inside every generation's VMEM budget ----
    target_out_block = 2 * 1024 * 1024
    tile_rows = max(16, (target_out_block // (lane_e * out_bytes)) // 16 * 16)
    tile_rows = min(tile_rows, _round_up(rows, 16))
    if _round_up(rows, 16) >= 32:
        tile_rows = min(tile_rows, _round_up(pl.cdiv(rows, 2), 16))  # feed both TCs

    def _vmem_est(tr):
        return (2 * tr * lane_e * out_bytes            # double-buffered output block
                + 2 * tr * j_pad * 4                   # double-buffered targets
                + 2 * lanes_k * lane_e * tab_bytes     # fused table (constant index map)
                + 2 * j_pad * lanes_k * 4              # expansion matrix
                + 4 * tr * max(lanes_k, 128) * 4)      # onehot / rhs / iota temporaries

    while tile_rows > 16 and _vmem_est(tile_rows) > 20 * 1024 * 1024:
        tile_rows = max(16, (tile_rows // 2) // 16 * 16)

    grid = (pl.cdiv(rows, tile_rows),)   # partial last block: OOB writes are masked off
    flops = 2 * rows * (j_pad * lanes_k + lanes_k * lane_e)
    bytes_accessed = (rows * j_pad * 4 + rows * lane_e * out_bytes
                      + lanes_k * lane_e * tab_bytes + j_pad * lanes_k * 4)

    kernel = _make_kernel(
        tab_dtype,
        jax.lax.Precision.HIGHEST if tab_dtype == jnp.dtype(jnp.float32) else None)

    out = pl.pallas_call(
        kernel,
        out_shape=jax.ShapeDtypeStruct((rows, lane_e), out_dtype),
        grid=grid,
        in_specs=[
            pl.BlockSpec((tile_rows, j_pad), lambda i: (i, 0)),
            # Constant index_maps: fetched once, stay VMEM resident.
            # TODO(synk): pipeline_mode=pl.Buffered(1) could reclaim the 2nd table buffer.
            pl.BlockSpec((j_pad, lanes_k), lambda i: (0, 0)),
            pl.BlockSpec((lanes_k, lane_e), lambda i: (0, 0)),
        ],
        out_specs=pl.BlockSpec((tile_rows, lane_e), lambda i: (i, 0)),
        compiler_params=pltpu.CompilerParams(
            dimension_semantics=("parallel",),        # shard the N axis across TCs
            vmem_limit_bytes=32 * 1024 * 1024,
        ),
        cost_estimate=pl.CostEstimate(flops=int(flops), transcendentals=0,
                                      bytes_accessed=int(bytes_accessed)),
    )(tgt, emat, table)

    if n_fold == n:
        # Pure row-major reshape of the lane-dense slab: free, no post-kernel copy.
        return out.reshape(b, s, e)
    # TODO(synk): fold does not divide B*S; this trailing slice copies the output once.
    return out.reshape(n_fold, e)[:n].reshape(b, s, e)


def _reference(position_ids, embeddings, shape, embedding_dim):
    """Pure-JAX reference mirroring the PyTorch forward."""
    total = _prod(shape)
    p = position_ids.astype(jnp.int32) % total
    parts = []
    stride = total
    for i, v in enumerate(shape):
        stride //= v
        coord = (p // stride) % v
        parts.append(embeddings[i][coord])
    return jnp.concatenate(parts, axis=-1)


if __name__ == "__main__":
    # Raw (pre-batch) data shape, e.g. (H, W); embedding_dim % len(shape) == 0.
    shape = (4, 8)
    embedding_dim = 32
    n_dim = len(shape)
    assert embedding_dim % n_dim == 0

    key = jax.random.PRNGKey(0)
    keys = jax.random.split(key, n_dim + 1)
    # nn.Parameter(torch.randn(shape[i], embedding_dim // n_dim) * 0.01), deterministic here.
    embeddings = [
        0.01 * jax.random.normal(keys[i], (shape[i], embedding_dim // n_dim), jnp.float32)
        for i in range(n_dim)
    ]

    B, S = 2, 8
    total = _prod(shape)
    position_ids = jax.random.randint(keys[-1], (B, S), 0, total, dtype=jnp.int32)
    position_ids = position_ids.at[0, 0].set(-1)  # allowed by the module; wraps to last index

    # Exact f32 path.
    out = broadcasted_position_embedding(position_ids, embeddings, shape, embedding_dim)
    out = jax.block_until_ready(out)
    ref = _reference(position_ids, embeddings, shape, embedding_dim)
    assert out.shape == (B, S, embedding_dim)
    assert jnp.allclose(out, ref, atol=1e-6), "f32 Pallas kernel mismatch vs reference"

    # Halved-writeback bf16 path (bf16 table + native single-pass MXU gather).
    out_bf16 = broadcasted_position_embedding(position_ids, embeddings, shape,
                                              embedding_dim, out_dtype=jnp.bfloat16)
    out_bf16 = jax.block_until_ready(out_bf16)
    ref_bf16 = _reference(position_ids,
                          [emb.astype(jnp.bfloat16) for emb in embeddings],
                          shape, embedding_dim)
    assert out_bf16.dtype == jnp.bfloat16
    assert jnp.allclose(out_bf16.astype(jnp.float32), ref_bf16.astype(jnp.float32),
                        atol=1e-3), "bf16 Pallas kernel mismatch vs reference"

    print("KERNEL_OK")
</pallas_src>

<mosaic_0001>
module attributes {stable_mosaic.version = 11 : i64} {
  func.func @kernel(%arg0: i32, %arg1: memref<16x8xi32, #tpu.memory_space<vmem>>, %arg2: memref<8x64xf32, #tpu.memory_space<vmem>>, %arg3: memref<64x128xf32, #tpu.memory_space<vmem>>, %arg4: memref<16x128xf32, #tpu.memory_space<vmem>>) attributes {dimension_semantics = [#tpu.dimension_semantics<parallel>], iteration_bounds = array<i64: 1>, scalar_prefetch = 0 : i64, scratch_operands = 0 : i64, tpu.core_type = #tpu.core_type<tc>, window_params = [{transform_indices = @transform_0, window_bounds = array<i64: 16, 8>}, {pipeline_mode = #tpu.pipeline_mode<synchronous>, transform_indices = @transform_1, window_bounds = array<i64: 8, 64>}, {pipeline_mode = #tpu.pipeline_mode<synchronous>, transform_indices = @transform_2, window_bounds = array<i64: 64, 128>}, {transform_indices = @transform_3, window_bounds = array<i64: 16, 128>}]} {
    %c0 = arith.constant 0 : index
    %c0_0 = arith.constant 0 : index
    %0 = vector.load %arg1[%c0, %c0_0] : memref<16x8xi32, #tpu.memory_space<vmem>>, vector<16x8xi32>
    %1 = arith.sitofp %0 : vector<16x8xi32> to vector<16x8xf32>
    %c0_1 = arith.constant 0 : index
    %c0_2 = arith.constant 0 : index
    %2 = vector.load %arg2[%c0_1, %c0_2] : memref<8x64xf32, #tpu.memory_space<vmem>>, vector<8x64xf32>
    %cst = arith.constant dense<0.000000e+00> : vector<16x64xf32>
    %3 = tpu.matmul %1, %2, %cst {dimension_numbers = #tpu.dot_dimension_numbers<[1], [0], [0], [1], [0, 0, 1, 1], [], []>, precision = #tpu.contract_precision<fp32>} : vector<16x8xf32>, vector<8x64xf32>, vector<16x64xf32> -> vector<16x64xf32>
    %4 = tpu.iota {dimensions = array<i32: 1>} : vector<16x64xi32>
    %5 = arith.sitofp %4 : vector<16x64xi32> to vector<16x64xf32>
    %6 = arith.cmpf oeq, %5, %3 : vector<16x64xf32>
    %7 = arith.extui %6 : vector<16x64xi1> to vector<16x64xi32>
    %8 = arith.sitofp %7 : vector<16x64xi32> to vector<16x64xf32>
    %c0_3 = arith.constant 0 : index
    %c0_4 = arith.constant 0 : index
    %9 = vector.load %arg3[%c0_3, %c0_4] : memref<64x128xf32, #tpu.memory_space<vmem>>, vector<64x128xf32>
    %cst_5 = arith.constant dense<0.000000e+00> : vector<16x128xf32>
    %10 = tpu.matmul %8, %9, %cst_5 {dimension_numbers = #tpu.dot_dimension_numbers<[1], [0], [0], [1], [0, 0, 1, 1], [], []>, precision = #tpu.contract_precision<fp32>} : vector<16x64xf32>, vector<64x128xf32>, vector<16x128xf32> -> vector<16x128xf32>
    %c0_6 = arith.constant 0 : index
    %c0_7 = arith.constant 0 : index
    %11 = vector.load %arg4[%c0_6, %c0_7] : memref<16x128xf32, #tpu.memory_space<vmem>>, vector<16x128xf32>
    tpu.vector_store %arg4[%c0_6, %c0_7], %10 {strides = array<i32>} : memref<16x128xf32, #tpu.memory_space<vmem>>, vector<16x128xf32>,
    return
  }
  func.func @transform_0(%arg0: i32) -> (i32, i32) {
    %c0_i32 = arith.constant 0 : i32
    %c0_i32_0 = arith.constant 0 : i32
    return %arg0, %c0_i32 : i32, i32
  }
  func.func @transform_1(%arg0: i32) -> (i32, i32) {
    %c0_i32 = arith.constant 0 : i32
    %c0_i32_0 = arith.constant 0 : i32
    %c0_i32_1 = arith.constant 0 : i32
    return %c0_i32, %c0_i32_0 : i32, i32
  }
  func.func @transform_2(%arg0: i32) -> (i32, i32) {
    %c0_i32 = arith.constant 0 : i32
    %c0_i32_0 = arith.constant 0 : i32
    %c0_i32_1 = arith.constant 0 : i32
    return %c0_i32, %c0_i32_0 : i32, i32
  }
  func.func @transform_3(%arg0: i32) -> (i32, i32) {
    %c0_i32 = arith.constant 0 : i32
    %c0_i32_0 = arith.constant 0 : i32
    return %arg0, %c0_i32 : i32, i32
  }
}

</mosaic_0001>

<bundles_post_ra>
// kernel: tpu_custom_call.1
= control target key start
LH: loop header
LB: loop body
LE: loop exit
PB: predicated region body
PF: predicated region fallthrough
CT: control target
= control target key end

     0   :  { %8 = vsyncpa [#allocation3], 0  ;;  %s1725_s0 = inlined_call_operand.hbm [shape: s32[4,8], index: 0, kind: input, shape index: {}]   ;;  %s1726_s1 = inlined_call_operand.hbm [shape: f32[8,64], index: 1, kind: input, shape index: {}]   ;;  %s1727_s2 = inlined_call_operand.hbm [shape: f32[64,128], index: 2, kind: input, shape index: {}]   ;;  %s1728_s3 = inlined_call_operand.hbm [shape: f32[4,128], index: 3, kind: output, shape index: {}]  }
   0x1   :  { %9 = vsyncpa [#allocation6], 0 }
   0x2   :  { %10 = vsyncpa [#allocation4], 0 }
   0x3   :  { %15 = vsyncadd [#allocation3], 192  ;;  %s1504_s12 = smov [#allocation5]   ;;  %s1505_s14 = smov [#allocation2]  }
   0x4   :  { %s29_s13 = sshll.u32 %s1504_s12, 4  ;;  %s16_s15 = sshll.u32 %s1505_s14, 4  ;;  %s30_s13 = int_to_ptr.vmem [resolvable:$true] %s29_s13  ;;  %s17_s15 = int_to_ptr.vmem [resolvable:$true] %s16_s15 }
   0x5   :  { %s1426_s16 = scalar_lea.vmem %s30_s13, 128  ;;  %p1431_p1 = scmp.lt.s32.totalorder %s30_s13, %s30_s13 }
   0x6   :  { %p1427_p0 = scmp.ne.s32.totalorder %s30_s13, %s1426_s16  ;;  %p1432_p2 = scmp.lt.s32.totalorder %s1426_s16, %s1426_s16 }
   0x8   :  { %p1433_p3 = por %p1432_p2, %p1431_p1 }
   0xa   :  { %p1434_p4 = pnand %p1433_p3, %p1427_p0 }
   0xc   :  { %1437 = shalt.err (!%p1434_p4)
}
   0xd   :  { %32 = dma.hbm_to_vmem [thread:$0]  %s1726_s1, 128, %s30_s13, [#allocation6]  }
   0xe   :  { %s1446_s19 = scalar_lea.vmem %s17_s15, 64  ;;  %s1450_s20 = scalar_lea.vmem %s17_s15, 256 }
   0xf   :  { %p1447_p5 = scmp.ne.s32.totalorder %s17_s15, %s1446_s19  ;;  %p1451_p6 = scmp.lt.s32.totalorder %s17_s15, %s17_s15 }
  0x10   :  { %p1452_p7 = scmp.lt.s32.totalorder %s1450_s20, %s1446_s19 }
  0x12   :  { %p1453_p8 = por %p1452_p7, %p1451_p6 }
  0x14   :  { %p1454_p9 = pnand %p1453_p8, %p1447_p5 }
  0x16   :  { %1457 = shalt.err (!%p1454_p9)
}
  0x17   :  { %s1506_s21 = smov 64   ;;  %s1507_s22 = smov 4  }
  0x18   :  { %22 = dma.hbm_to_vmem [thread:$0]  %s1725_s0, 64, %s17_s15, [#allocation3], %s1506_s21, %s1506_s21, %s1507_s22  }
  0x19   :  { %s1508_s25 = smov [#allocation7]  }
  0x1a   :  { %s38_s26 = sshll.u32 %s1508_s25, 4  ;;  %s39_s26 = int_to_ptr.vmem [resolvable:$true] %s38_s26 }
  0x1b   :  { %s1466_s1 = scalar_lea.vmem %s39_s26, 1024  ;;  %p1471_p11 = scmp.lt.s32.totalorder %s39_s26, %s39_s26 }
  0x1c   :  { %p1467_p10 = scmp.ne.s32.totalorder %s39_s26, %s1466_s1  ;;  %p1472_p12 = scmp.lt.s32.totalorder %s1466_s1, %s1466_s1 }
  0x1e   :  { %p1473_p13 = por %p1472_p12, %p1471_p11 }
  0x20   :  { %p1474_p0 = pnand %p1473_p13, %p1467_p10 }
  0x22   :  { %1477 = shalt.err (!%p1474_p0)
}
  0x23   :  { %s1509_s27 = smov 128   ;;  %s1510_s28 = smov 8  }
  0x24   :  { %44 = dma.hbm_to_vmem [thread:$0]  %s1727_s2, 1024, %s39_s26, [#allocation6], %s1509_s27, %s1509_s27, %s1510_s28  }
  0x25   :  { %1498 = dma.done.wait [#allocation3], 256  }
  0x26   :  { %1499 = vsyncadd [#allocation3], 4294967040 }
  0x27   :  { %1500 = dma.done.wait [#allocation6], 1152  }
  0x28   :  { %1501 = vsyncadd [#allocation6], 4294966144  ;;  %v58_v0 = vld [vmem:[#allocation5] sm:$0xff]  ;;  %v54_v1 = vld [vmem:[#allocation2] sm:$0xff]  ;;  %vm59_vm0 = vcmask 64512   ;;  %vm572_vm1 = vcmask 523264  }
  0x29   :  { %v55_v2 = vld [vmem:[#allocation2 + $0x8] sm:$0xff]  ;;  %v97_v3 = vand.u32 4294901760, %v58_v0  ;;  %v56_v4 = vcvt.s32.f32 %v54_v1  ;;  %v571_v22 = vld [vmem:[#allocation7 + $0x38] sm:$0xff]  ;;  %v569_v27 = vld [vmem:[#allocation7 + $0x28] sm:$0xff] }
  0x2a   :  { %v57_v5 = vcvt.s32.f32 %v55_v2  ;;  %v1545_v23 = vand.u32 4294901760, %v571_v22  ;;  %v570_v24 = vld [vmem:[#allocation7 + $0x30] sm:$0xff]  ;;  %v1560_v30 = vand.u32 4294901760, %v569_v27  ;;  %v568_v31 = vld [vmem:[#allocation7 + $0x20] sm:$0xff]  ;;  %v567_v36 = vld [vmem:[#allocation7 + $0x18] sm:$0xff] }
  0x2b   :  { %1265 = vmatprep.subr.mxu0 %v97_v3  ;;  %v184_v6 = vsub.f32 %v58_v0, %v97_v3  ;;  %v61_v7 = vsel %vm59_vm0, %v56_v4, 0  ;;  %v1550_v26 = vand.u32 4294901760, %v570_v24  ;;  %v1572_v35 = vand.u32 4294901760, %v568_v31  ;;  %v566_v42 = vld [vmem:[#allocation7 + $0x10] sm:$0xff]  ;;  %v565_v48 = vld [vmem:[#allocation7 + $0x8] sm:$0xff]  ;;  %v564_v54 = vld [vmem:[#allocation7] sm:$0xff] }
  0x2c   :  { %v64_v8 = vsel %vm59_vm0, %v57_v5, 0  ;;  %1266 = vmatpush3.msra.mxu0 %v97_v3  ;;  %v132_v9 = vand.u32 4294901760, %v61_v7  ;;  %v1548_v25 = vsub.f32 %v571_v22, %v1545_v23  ;;  %v1570_v34 = vsub.f32 %v569_v27, %v1560_v30 }
  0x2d   :  { %v142_v10 = vand.u32 4294901760, %v64_v8  ;;  %v185_v11 = vand.u32 4294901760, %v184_v6  ;;  %1275 = vmatprep.subr.mxu0 %v184_v6  ;;  %v1558_v29 = vsub.f32 %v570_v24, %v1550_v26  ;;  %v1582_v40 = vsub.f32 %v568_v31, %v1572_v35 }
  0x2e   :  { %v133_v12 = vsub.f32 %v61_v7, %v132_v9  ;;  %1272 = vmatprep.mubr.f32.mxu1 %v132_v9  ;;  %v1555_v28 = vand.u32 4294901760, %v1548_v25  ;;  %v1579_v39 = vand.u32 4294901760, %v1570_v34  ;;  %v1585_v41 = vand.u32 4294901760, %v567_v36 }
  0x2f   :  { %v143_v13 = vsub.f32 %v64_v8, %v142_v10  ;;  %v186_v14 = vsub.f32 %v184_v6, %v185_v11  ;;  %v1567_v33 = vand.u32 4294901760, %v1558_v29  ;;  %v1591_v45 = vand.u32 4294901760, %v1582_v40 }
  0x30   :  { %v134_v15 = vand.u32 4294901760, %v133_v12  ;;  %v692_v32 = vsub.f32 %v1548_v25, %v1555_v28  ;;  %v706_v44 = vsub.f32 %v1570_v34, %v1579_v39  ;;  %v1593_v46 = vand.u32 4294901760, %v566_v42 }
  0x31   :  { %v144_v16 = vand.u32 4294901760, %v143_v13  ;;  %v187_v17 = vand.u32 4294901760, %v186_v14  ;;  %v699_v38 = vsub.f32 %v1558_v29, %v1567_v33  ;;  %v1596_v47 = vsub.f32 %v567_v36, %v1585_v41 }
  0x32   :  { %v135_v18 = vsub.f32 %v133_v12, %v134_v15  ;;  %v693_v37 = vand.u32 4294901760, %v692_v32  ;;  %v707_v49 = vand.u32 4294901760, %v706_v44  ;;  %v713_v50 = vsub.f32 %v1582_v40, %v1591_v45 }
  0x33   :  { %v145_v19 = vsub.f32 %v143_v13, %v144_v16  ;;  %1270 = vmatprep.subr.mxu1 %v187_v17  ;;  %v700_v43 = vand.u32 4294901760, %v699_v38  ;;  %v1602_v51 = vsub.f32 %v566_v42, %v1593_v46  ;;  %v1604_v52 = vand.u32 4294901760, %v565_v48 }
  0x34   :  { %v136_v20 = vand.u32 4294901760, %v135_v18  ;;  %1271 = vmatpush3.msra.mxu1 %v187_v17  ;;  %v1608_v53 = vand.u32 4294901760, %v1596_v47  ;;  %v714_v55 = vand.u32 4294901760, %v713_v50  ;;  %v1617_v58 = vand.u32 4294901760, %v564_v54 }
  0x35   :  { %v146_v21 = vand.u32 4294901760, %v145_v19  ;;  %1273 = vmatmul.mubr.f32.vlgmr.msra.gmra.mxu1 %v142_v10  ;;  %1280 = vmatprep.subr.mxu1 %v97_v3  ;;  %v1612_v56 = vand.u32 4294901760, %v1602_v51  ;;  %v1615_v57 = vsub.f32 %v565_v48, %v1604_v52 }
  0x36   :  { %1267 = vmatprep.mubr.f32.mxu0 %v136_v20  ;;  %1281 = vmatpush3.msra.mxu1 %v97_v3  ;;  %v720_v59 = vsub.f32 %v1596_v47, %v1608_v53  ;;  %v1629_v62 = vsub.f32 %v564_v54, %v1617_v58 }
  0x37   :  { %1268 = vmatmul.mubr.f32.vlgmr.msra.gmra.mxu0 %v146_v21  ;;  %1282 = vmatprep.mubr.f32.mxu1 %v134_v15  ;;  %v727_v60 = vsub.f32 %v1602_v51, %v1612_v56  ;;  %v1626_v61 = vand.u32 4294901760, %v1615_v57 }
  0x38   :  { %1276 = vmatpush3.msra.mxu0 %v184_v6  ;;  %1277 = vmatprep.mubr.f32.mxu0 %v133_v12  ;;  %v721_v63 = vand.u32 4294901760, %v720_v59  ;;  %v1636_v2 = vand.u32 4294901760, %v1629_v62 }
  0x39   :  { %1285 = vmatprep.subr.mxu0 %v185_v11  ;;  %1283 = vmatmul.mubr.f32.vlgmr.msra.gmra.mxu1 %v144_v16  ;;  %v728_v0 = vand.u32 4294901760, %v727_v60  ;;  %v734_v1 = vsub.f32 %v1615_v57, %v1626_v61 }
  0x3a   :  { %1290 = vmatprep.subr.mxu1 %v97_v3  ;;  %1292 = vmatprep.mubr.f32.mxu1 %v132_v9  ;;  %v741_v4 = vsub.f32 %v1629_v62, %v1636_v2 }
  0x3b   :  { %1278 = vmatmul.mubr.f32.vlgmr.msra.gmra.mxu0 %v143_v13  ;;  %1291 = vmatpush3.msra.mxu1 %v97_v3  ;;  %v735_v3 = vand.u32 4294901760, %v734_v1 }
  0x3c   :  { %1286 = vmatpush3.msra.mxu0 %v185_v11  ;;  %1287 = vmatprep.mubr.f32.mxu0 %v132_v9  ;;  %v742_v5 = vand.u32 4294901760, %v741_v4  ;;  %v555_v9 = vlaneseq }
  0x3d   :  { %1293 = vmatmul.mubr.f32.vlgmr.msra.gmra.mxu1 %v142_v10  ;;  %1295 = vmatprep.subr.mxu0 %v1545_v23 }
  0x3e   :  { %1314 = vmatprep.subr.mxu1 %v693_v37  ;;  %v556_v17 = vand.u32 127, %v555_v9 }
  0x3f   :  { %1288 = vmatmul.mubr.f32.vlgmr.msra.gmra.mxu0 %v142_v10  ;;  %1315 = vmatpush3.msra.mxu1 %v693_v37 }
  0x40   :  { %1296 = vmatpush3.msra.mxu0 %v1545_v23  ;;  %1316 = vmatprep.subr.mxu1 %v700_v43  ;;  %v557_v31 = vcvt.s32.f32 %v556_v17 }
  0x41   :  { %1297 = vmatprep.subr.mxu0 %v1550_v26  ;;  %1317 = vmatpush3.msra.mxu1 %v700_v43  ;;  %v1511_v43 = vmov 0.0  }
  0x42   :  { %1298 = vmatpush3.msra.mxu0 %v1550_v26  ;;  %1318 = vmatprep.subr.mxu1 %v707_v49 }
  0x43   :  { %1299 = vmatprep.subr.mxu0 %v1560_v30  ;;  %1319 = vmatpush3.msra.mxu1 %v707_v49 }
  0x44   :  { %1300 = vmatpush3.msra.mxu0 %v1560_v30  ;;  %1320 = vmatprep.subr.mxu1 %v714_v55 }
  0x45   :  { %1301 = vmatprep.subr.mxu0 %v1572_v35  ;;  %1321 = vmatpush3.msra.mxu1 %v714_v55 }
  0x46   :  { %1302 = vmatpush3.msra.mxu0 %v1572_v35  ;;  %1322 = vmatprep.subr.mxu1 %v721_v63 }
  0x47   :  { %1303 = vmatprep.subr.mxu0 %v1585_v41  ;;  %1323 = vmatpush3.msra.mxu1 %v721_v63 }
  0x48   :  { %1304 = vmatpush3.msra.mxu0 %v1585_v41  ;;  %1324 = vmatprep.subr.mxu1 %v728_v0 }
  0x49   :  { %1305 = vmatprep.subr.mxu0 %v1593_v46  ;;  %1325 = vmatpush3.msra.mxu1 %v728_v0 }
  0x4a   :  { %1306 = vmatpush3.msra.mxu0 %v1593_v46  ;;  %1326 = vmatprep.subr.mxu1 %v735_v3 }
  0x4b   :  { %1307 = vmatprep.subr.mxu0 %v1604_v52  ;;  %1327 = vmatpush3.msra.mxu1 %v735_v3 }
  0x4c   :  { %1308 = vmatpush3.msra.mxu0 %v1604_v52  ;;  %1328 = vmatprep.subr.mxu1 %v742_v5 }
  0x4d   :  { %1309 = vmatprep.subr.mxu0 %v1617_v58  ;;  %1329 = vmatpush3.msra.mxu1 %v742_v5 }
  0x4e   :  { %1310 = vmatpush3.msra.mxu0 %v1617_v58  ;;  %1352 = vmatprep.subr.mxu1 %v1545_v23 }
  0x4f   :  { %1333 = vmatprep.subr.mxu0 %v1548_v25 }
  0xf5   :  { %v1274_v6 = vpop.f32.mrf.mxu1 }
  0xf7   :  { %v1269_v7 = vpop.f32.mrf.mxu0  ;;  %v224_v8 = vpop.f32.mrf.mxu1 }
  0xf8   :  { %v231_v12 = vadd.f32 %v1274_v6, %v1269_v7 }
  0xf9   :  { %v138_v10 = vpop.f32.mrf.mxu0  ;;  %v1284_v11 = vpop.f32.mrf.mxu1 }
  0xfa   :  { %v225_v15 = vadd.f32 %v224_v8, %v138_v10 }
  0xfb   :  { %v1279_v13 = vpop.f32.mrf.mxu0  ;;  %v385_v14 = vpop.f32.mrf.mxu1 }
  0xfc   :  { %v312_v16 = vadd.f32 %v1279_v13, %v231_v12 }
  0xfd   :  { %v304_v18 = vpop.f32.mrf.mxu0  ;;  %v1294_v22 = vpop.f32.mrf.mxu1 }
  0xfe   :  { %v394_v19 = vadd.f32 %v1284_v11, %v312_v16  ;;  %v305_v20 = vadd.f32 %v304_v18, %v225_v15 }
  0xff   :  { %v1289_v21 = vpop.f32.mrf.mxu0  ;;  %v545_v38 = vpop.f32.mrf.mxu1 }
 0x100   :  { %v386_v24 = vadd.f32 %v385_v14, %v305_v20  ;;  %v474_v27 = vadd.f32 %v1289_v21, %v394_v19 }
 0x101   :  { %v467_v32 = vpop.f32.mrf.mxu0 }
 0x102   :  { %v552_v36 = vadd.f32 %v1294_v22, %v474_v27  ;;  %v468_v37 = vadd.f32 %v467_v32, %v386_v24 }
 0x104   :  { %vm559_vm2 = vcmp.eq.f32.partialorder %v557_v31, %v552_v36  ;;  %v546_v42 = vadd.f32 %v545_v38, %v468_v37 }
 0x105   :  { %v1643_v44 = vsel %vm559_vm2, 1.0, %v1511_v43 }
 0x106   :  { %v577_v48 = vsel %vm572_vm1, %v1643_v44, 0  ;;  %vm558_vm3 = vcmp.eq.f32.partialorder %v557_v31, %v546_v42 }
 0x107   :  { %v663_v49 = vsub.f32 %v577_v48, %v577_v48  ;;  %v1179_v50 = vsel %vm558_vm3, 1.0, %v1511_v43 }
 0x108   :  { %v574_v54 = vsel %vm572_vm1, %v1179_v50, 0  ;;  %1330 = vmatprep.mubr.msk.f32.mxu1 %vm572_vm1, %v1179_v50 }
 0x109   :  { %v653_v55 = vsub.f32 %v574_v54, %v574_v54  ;;  %1331 = vmatmul.mubr.msk.f32.vlgmr.msra.gmra.mxu1 %vm572_vm1, %v1643_v44  ;;  %v664_v59 = vand.u32 4294901760, %v663_v49 }
 0x10a   :  { %1353 = vmatpush3.msra.mxu1 %v1545_v23 }
 0x10b   :  { %1354 = vmatprep.subr.mxu1 %v1550_v26  ;;  %v654_v60 = vand.u32 4294901760, %v653_v55  ;;  %v665_v63 = vsub.f32 %v663_v49, %v664_v59 }
 0x10c   :  { %1355 = vmatpush3.msra.mxu1 %v1550_v26 }
 0x10d   :  { %1356 = vmatprep.subr.mxu1 %v1560_v30  ;;  %1368 = vmatprep.mubr.f32.mxu1 %v654_v60  ;;  %v655_v0 = vsub.f32 %v653_v55, %v654_v60  ;;  %v666_v3 = vand.u32 4294901760, %v665_v63 }
 0x10e   :  { %1357 = vmatpush3.msra.mxu1 %v1560_v30 }
 0x10f   :  { %1358 = vmatprep.subr.mxu1 %v1572_v35  ;;  %v656_v1 = vand.u32 4294901760, %v655_v0 }
 0x110   :  { %1359 = vmatpush3.msra.mxu1 %v1572_v35 }
 0x111   :  { %1360 = vmatprep.subr.mxu1 %v1585_v41  ;;  %1311 = vmatprep.mubr.f32.mxu0 %v656_v1 }
 0x112   :  { %1361 = vmatpush3.msra.mxu1 %v1585_v41  ;;  %1312 = vmatmul.mubr.f32.vlgmr.msra.gmra.mxu0 %v666_v3 }
 0x113   :  { %1334 = vmatpush3.msra.mxu0 %v1548_v25  ;;  %1362 = vmatprep.subr.mxu1 %v1593_v46 }
 0x114   :  { %1335 = vmatprep.subr.mxu0 %v1558_v29  ;;  %1349 = vmatprep.mubr.f32.mxu0 %v653_v55 }
 0x115   :  { %1363 = vmatpush3.msra.mxu1 %v1593_v46  ;;  %1336 = vmatpush3.msra.mxu0 %v1558_v29 }
 0x116   :  { %1364 = vmatprep.subr.mxu1 %v1604_v52  ;;  %1337 = vmatprep.subr.mxu0 %v1570_v34 }
 0x117   :  { %1365 = vmatpush3.msra.mxu1 %v1604_v52  ;;  %1338 = vmatpush3.msra.mxu0 %v1570_v34 }
 0x118   :  { %1366 = vmatprep.subr.mxu1 %v1617_v58  ;;  %1339 = vmatprep.subr.mxu0 %v1582_v40 }
 0x119   :  { %1367 = vmatpush3.msra.mxu1 %v1617_v58  ;;  %1340 = vmatpush3.msra.mxu0 %v1582_v40 }
 0x11a   :  { %1369 = vmatmul.mubr.f32.vlgmr.msra.gmra.mxu1 %v664_v59  ;;  %1390 = vmatprep.subr.mxu1 %v1545_v23 }
 0x11b   :  { %1341 = vmatprep.subr.mxu0 %v1596_v47  ;;  %1391 = vmatpush3.msra.mxu1 %v1545_v23 }
 0x11c   :  { %1406 = vmatprep.mubr.msk.f32.mxu1 %vm572_vm1, %v1179_v50  ;;  %1342 = vmatpush3.msra.mxu0 %v1596_v47 }
 0x11d   :  { %1392 = vmatprep.subr.mxu1 %v1550_v26  ;;  %1343 = vmatprep.subr.mxu0 %v1602_v51 }
 0x11e   :  { %1393 = vmatpush3.msra.mxu1 %v1550_v26  ;;  %1344 = vmatpush3.msra.mxu0 %v1602_v51 }
 0x11f   :  { %1394 = vmatprep.subr.mxu1 %v1560_v30  ;;  %1345 = vmatprep.subr.mxu0 %v1615_v57 }
 0x120   :  { %1395 = vmatpush3.msra.mxu1 %v1560_v30  ;;  %1346 = vmatpush3.msra.mxu0 %v1615_v57 }
 0x121   :  { %1396 = vmatprep.subr.mxu1 %v1572_v35  ;;  %1347 = vmatprep.subr.mxu0 %v1629_v62 }
 0x122   :  { %1397 = vmatpush3.msra.mxu1 %v1572_v35  ;;  %1348 = vmatpush3.msra.mxu0 %v1629_v62 }
 0x123   :  { %1398 = vmatprep.subr.mxu1 %v1585_v41  ;;  %1350 = vmatmul.mubr.f32.vlgmr.msra.gmra.mxu0 %v663_v49 }
 0x124   :  { %1371 = vmatprep.subr.mxu0 %v1555_v28  ;;  %1399 = vmatpush3.msra.mxu1 %v1585_v41 }
 0x125   :  { %1372 = vmatpush3.msra.mxu0 %v1555_v28  ;;  %1387 = vmatprep.mubr.msk.f32.mxu0 %vm572_vm1, %v1179_v50 }
 0x126   :  { %1400 = vmatprep.subr.mxu1 %v1593_v46  ;;  %1373 = vmatprep.subr.mxu0 %v1567_v33 }
 0x127   :  { %1401 = vmatpush3.msra.mxu1 %v1593_v46  ;;  %1374 = vmatpush3.msra.mxu0 %v1567_v33 }
 0x128   :  { %1402 = vmatprep.subr.mxu1 %v1604_v52  ;;  %1375 = vmatprep.subr.mxu0 %v1579_v39 }
 0x129   :  { %1403 = vmatpush3.msra.mxu1 %v1604_v52  ;;  %1376 = vmatpush3.msra.mxu0 %v1579_v39 }
 0x12a   :  { %1404 = vmatprep.subr.mxu1 %v1617_v58  ;;  %1377 = vmatprep.subr.mxu0 %v1591_v45 }
 0x12b   :  { %1405 = vmatpush3.msra.mxu1 %v1617_v58  ;;  %1378 = vmatpush3.msra.mxu0 %v1591_v45 }
 0x12c   :  { %1407 = vmatmul.mubr.msk.f32.vlgmr.msra.gmra.mxu1 %vm572_vm1, %v1643_v44  ;;  %1379 = vmatprep.subr.mxu0 %v1608_v53 }
 0x12d   :  { %1380 = vmatpush3.msra.mxu0 %v1608_v53 }
 0x12e   :  { %1381 = vmatprep.subr.mxu0 %v1612_v56 }
 0x12f   :  { %1382 = vmatpush3.msra.mxu0 %v1612_v56 }
 0x130   :  { %1383 = vmatprep.subr.mxu0 %v1626_v61 }
 0x131   :  { %1384 = vmatpush3.msra.mxu0 %v1626_v61 }
 0x132   :  { %1385 = vmatprep.subr.mxu0 %v1636_v2 }
 0x133   :  { %1386 = vmatpush3.msra.mxu0 %v1636_v2 }
 0x134   :  { %1388 = vmatmul.mubr.msk.f32.vlgmr.msra.gmra.mxu0 %vm572_vm1, %v1643_v44 }
 0x1c9   :  { %v1332_v25 = vpop.f32.mrf.mxu1 }
 0x1cb   :  { %v779_v29 = vpop.f32.mrf.mxu1 }
 0x1d2   :  { %v1313_v23 = vpop.f32.mrf.mxu0 }
 0x1d3   :  { %v786_v30 = vadd.f32 %v1332_v25, %v1313_v23 }
 0x1d4   :  { %v658_v26 = vpop.f32.mrf.mxu0 }
 0x1d5   :  { %v780_v35 = vadd.f32 %v779_v29, %v658_v26 }
 0x1da   :  { %v1370_v33 = vpop.f32.mrf.mxu1 }
 0x1dc   :  { %v961_v41 = vpop.f32.mrf.mxu1 }
 0x1e3   :  { %v1351_v28 = vpop.f32.mrf.mxu0 }
 0x1e4   :  { %v881_v39 = vadd.f32 %v1351_v28, %v786_v30 }
 0x1e5   :  { %v873_v34 = vpop.f32.mrf.mxu0 }
 0x1e6   :  { %v874_v40 = vadd.f32 %v873_v34, %v780_v35  ;;  %v970_v45 = vadd.f32 %v1370_v33, %v881_v39 }
 0x1e8   :  { %v962_v52 = vadd.f32 %v961_v41, %v874_v40 }
 0x1ec   :  { %v1408_v46 = vpop.f32.mrf.mxu1 }
 0x1ee   :  { %v1149_v58 = vpop.f32.mrf.mxu1 }
 0x1f4   :  { %v1389_v47 = vpop.f32.mrf.mxu0 }
 0x1f5   :  { %v1071_v51 = vadd.f32 %v1389_v47, %v970_v45 }
 0x1f6   :  { %v1064_v53 = vpop.f32.mrf.mxu0 }
 0x1f7   :  { %v1156_v56 = vadd.f32 %v1408_v46, %v1071_v51  ;;  %v1065_v57 = vadd.f32 %v1064_v53, %v962_v52 }
 0x1f9   :  { %1160 = vst [vmem:[#allocation8 + $0x8] sm:$0xff] %v1156_v56  ;;  %v1150_v61 = vadd.f32 %v1149_v58, %v1065_v57 }
 0x1fb   :  { %1159 = vst [vmem:[#allocation8] sm:$0xff] %v1150_v61 }
 0x1fc   :  { %1165 = vsyncadd [#allocation4], 192  ;;  %s1512_s0 = smov [#allocation8]  }
 0x1fd   :  { %s1166_s2 = sshll.u32 %s1512_s0, 4  ;;  %s1167_s2 = int_to_ptr.vmem [resolvable:$true] %s1166_s2 }
 0x1fe   :  { %s1478_s4 = scalar_lea.vmem %s1167_s2, 64  ;;  %s1482_s5 = scalar_lea.vmem %s1167_s2, 256 }
 0x1ff   :  { %p1479_p1 = scmp.ne.s32.totalorder %s1167_s2, %s1478_s4  ;;  %p1483_p2 = scmp.lt.s32.totalorder %s1167_s2, %s1167_s2 }
 0x200   :  { %p1484_p3 = scmp.lt.s32.totalorder %s1482_s5, %s1478_s4 }
 0x202   :  { %p1485_p4 = por %p1484_p3, %p1483_p2 }
 0x204   :  { %p1486_p5 = pnand %p1485_p4, %p1479_p1 }
 0x206   :  { %1489 = shalt.err (!%p1486_p5)
}
 0x207   :  { %1172 = dma.vmem_to_hbm [thread:$0]  %s1167_s2, 64, %s1728_s3, [#allocation4], %s1506_s21, %s1506_s21, %s1507_s22  }
 0x208   :  { %1502 = dma.done.wait [#allocation4], 256  }
 0x209   :  { %1503 = vsyncadd [#allocation4], 4294967040 }
 0x20a   :  { %1176 = vsyncpa [#allocation3], 1 }
 0x20b   :  { %1177 = vsyncpa [#allocation6], 1 }
 0x20c   :  { %1178 = vsyncpa [#allocation4], 1 }

</bundles_post_ra>
